<compile_context>
chip_gen: v6e
topology: v6e:2x2x1
jax: 0.10.0
libtpu: 0.0.40
codegen_flags: <defaults>
</compile_context>

<pallas_src>
import functools

import jax
import jax.numpy as jnp
from jax.experimental import pallas as pl
from jax.experimental.pallas import tpu as pltpu


# Keep the double-buffered tile footprint under this budget so the kernel fits
# the scoped-VMEM limit on every TPU generation (v7x has only 64 MiB physical).
_VMEM_TILE_BUDGET = 40 * 1024 * 1024
_VMEM_LIMIT_BYTES = 48 * 1024 * 1024


def _unembed_kernel(x_ref, w_ref, o_ref):
    # One MXU matmul over the full d_model contraction; f32 accumulation,
    # single unmasked store of the finished (tm, tn) logits tile.
    o_ref[...] = jnp.dot(
        x_ref[...], w_ref[...], preferred_element_type=jnp.float32
    ).astype(o_ref.dtype)


def _pick_tiles(m, d_model, d_vocab, in_bytes, out_bytes, tm, tn):
    """Clamp/align tiles and shrink them until they fit the VMEM budget."""
    # Full-dim blocks are always legal; otherwise keep (8, 128) alignment so
    # partial last tiles (cdiv grid) are still valid block shapes.
    tm = m if m <= tm else max(8, (tm // 8) * 8)
    tn = d_vocab if d_vocab <= tn else max(128, (tn // 128) * 128)

    def footprint(tm_, tn_):
        # Double-buffered x tile + W_U slab + output tile.
        return 2 * (
            tm_ * d_model * in_bytes
            + d_model * tn_ * in_bytes
            + tm_ * tn_ * out_bytes
        )

    while footprint(tm, tn) > _VMEM_TILE_BUDGET:
        if tn > 128:
            tn = max(128, tn // 2)
        elif tm > 8:
            tm = max(8, tm // 2)
        else:
            break
    return tm, tn


@functools.partial(
    jax.jit, static_argnames=("tm", "tn", "compute_dtype", "out_dtype")
)
def unembed(x, w_u, *, tm=256, tn=512, compute_dtype=None, out_dtype=None):
    """x: (..., d_model), w_u: (d_model, d_vocab) -> (..., d_vocab)."""
    *lead, d_model = x.shape
    d_model_w, d_vocab = w_u.shape
    assert d_model == d_model_w, (d_model, d_model_w)

    out_dtype = x.dtype if out_dtype is None else out_dtype

    m = 1
    for s in lead:
        m *= s
    x2d = x.reshape(m, d_model)

    if compute_dtype is not None:
        # bf16 MXU feed: halves HBM traffic for W_U; accumulation stays f32.
        x2d = x2d.astype(compute_dtype)
        w_u = w_u.astype(compute_dtype)

    in_bytes = max(jnp.dtype(x2d.dtype).itemsize, jnp.dtype(w_u.dtype).itemsize)
    out_bytes = jnp.dtype(out_dtype).itemsize
    tm, tn = _pick_tiles(m, d_model, d_vocab, in_bytes, out_bytes, tm, tn)
    # TODO(synk): if d_model is so large that a single (d_model, 128) weight
    # slab exceeds the VMEM budget, a K-split accumulator grid is needed.

    grid_m = pl.cdiv(m, tm)
    grid_n = pl.cdiv(d_vocab, tn)

    flops = 2 * m * d_model * d_vocab
    bytes_accessed = (
        x2d.size * jnp.dtype(x2d.dtype).itemsize
        + w_u.size * jnp.dtype(w_u.dtype).itemsize
        + m * d_vocab * out_bytes
    )

    out2d = pl.pallas_call(
        _unembed_kernel,
        out_shape=jax.ShapeDtypeStruct((m, d_vocab), out_dtype),
        grid_spec=pltpu.PrefetchScalarGridSpec(
            num_scalar_prefetch=0,
            # Vocab tiles outermost, row tiles innermost: the W_U block index
            # is constant across the inner axis, so each W_U slab is fetched
            # from HBM exactly once and reused for every row tile of x.
            grid=(grid_n, grid_m),
            in_specs=[
                pl.BlockSpec((tm, d_model), lambda j, i: (i, 0)),   # x rows
                pl.BlockSpec((d_model, tn), lambda j, i: (0, j)),   # W_U slab
                # NOTE: if DMA at vocab-tile boundaries is ever exposed, add
                # pipeline_mode=pl.Buffered(3) on the W_U spec (needs headroom).
            ],
            out_specs=pl.BlockSpec((tm, tn), lambda j, i: (i, j)),
        ),
        compiler_params=pltpu.CompilerParams(
            dimension_semantics=("parallel", "parallel"),
            vmem_limit_bytes=_VMEM_LIMIT_BYTES,
        ),
        cost_estimate=pl.CostEstimate(
            flops=flops, transcendentals=0, bytes_accessed=bytes_accessed
        ),
    )(x2d, w_u)

    return out2d.reshape(*lead, d_vocab)


if __name__ == "__main__":
    # Small shapes implied by the module: x: (batch, seq, d_model).
    batch, seq, d_model, d_vocab = 2, 8, 32, 128

    key = jax.random.PRNGKey(0)
    kx, kw = jax.random.split(key)

    # Deterministic parameter init mirroring: randn(d_model, d_vocab)/sqrt(d_vocab)
    W_U = jax.random.normal(kw, (d_model, d_vocab), dtype=jnp.float32) / jnp.sqrt(
        jnp.float32(d_vocab)
    )
    x = jax.random.normal(kx, (batch, seq, d_model), dtype=jnp.float32)

    ref = x @ W_U

    # Full-precision path (matches the PyTorch module's f32 matmul semantics).
    out = jax.block_until_ready(unembed(x, W_U))
    assert out.shape == (batch, seq, d_vocab)
    assert jnp.allclose(out, ref, atol=1e-5, rtol=1e-5)

    # bf16 MXU-feed path with f32 accumulation (the bandwidth-optimal config
    # for real unembed shapes); loose tolerance due to bf16 input rounding.
    out_bf16 = jax.block_until_ready(unembed(x, W_U, compute_dtype=jnp.bfloat16))
    assert out_bf16.shape == (batch, seq, d_vocab)
    assert jnp.allclose(out_bf16, ref, atol=1e-1, rtol=1e-1)

    print("KERNEL_OK")
</pallas_src>

<mosaic_0001>
module attributes {stable_mosaic.version = 11 : i64} {
  func.func @_unembed_kernel(%arg0: i32, %arg1: i32, %arg2: memref<16x32xf32, #tpu.memory_space<vmem>>, %arg3: memref<32x128xf32, #tpu.memory_space<vmem>>, %arg4: memref<16x128xf32, #tpu.memory_space<vmem>>) attributes {dimension_semantics = [#tpu.dimension_semantics<parallel>, #tpu.dimension_semantics<parallel>], iteration_bounds = array<i64: 1, 1>, scalar_prefetch = 0 : i64, scratch_operands = 0 : i64, tpu.core_type = #tpu.core_type<tc>, window_params = [{transform_indices = @transform_0, window_bounds = array<i64: 16, 32>}, {transform_indices = @transform_1, window_bounds = array<i64: 32, 128>}, {transform_indices = @transform_2, window_bounds = array<i64: 16, 128>}]} {
    %c0 = arith.constant 0 : index
    %c0_0 = arith.constant 0 : index
    %0 = vector.load %arg2[%c0, %c0_0] : memref<16x32xf32, #tpu.memory_space<vmem>>, vector<16x32xf32>
    %c0_1 = arith.constant 0 : index
    %c0_2 = arith.constant 0 : index
    %1 = vector.load %arg3[%c0_1, %c0_2] : memref<32x128xf32, #tpu.memory_space<vmem>>, vector<32x128xf32>
    %cst = arith.constant dense<0.000000e+00> : vector<16x128xf32>
    %2 = tpu.matmul %0, %1, %cst {dimension_numbers = #tpu.dot_dimension_numbers<[1], [0], [0], [1], [0, 0, 1, 1], [], []>} : vector<16x32xf32>, vector<32x128xf32>, vector<16x128xf32> -> vector<16x128xf32>
    %c0_3 = arith.constant 0 : index
    %c0_4 = arith.constant 0 : index
    %3 = vector.load %arg4[%c0_3, %c0_4] : memref<16x128xf32, #tpu.memory_space<vmem>>, vector<16x128xf32>
    tpu.vector_store %arg4[%c0_3, %c0_4], %2 {strides = array<i32>} : memref<16x128xf32, #tpu.memory_space<vmem>>, vector<16x128xf32>,
    return
  }
  func.func @transform_0(%arg0: i32, %arg1: i32) -> (i32, i32) {
    %c0_i32 = arith.constant 0 : i32
    %c0_i32_0 = arith.constant 0 : i32
    return %arg1, %c0_i32 : i32, i32
  }
  func.func @transform_1(%arg0: i32, %arg1: i32) -> (i32, i32) {
    %c0_i32 = arith.constant 0 : i32
    %c0_i32_0 = arith.constant 0 : i32
    return %c0_i32, %arg0 : i32, i32
  }
  func.func @transform_2(%arg0: i32, %arg1: i32) -> (i32, i32) {
    %c0_i32 = arith.constant 0 : i32
    return %arg1, %arg0 : i32, i32
  }
}

</mosaic_0001>

<bundles_post_ra>
// kernel: unembed.1
= control target key start
LH: loop header
LB: loop body
LE: loop exit
PB: predicated region body
PF: predicated region fallthrough
CT: control target
= control target key end

     0   :  { %7 = vsyncpa [#allocation3], 0  ;;  %s278_s0 = inlined_call_operand.hbm [shape: f32[16,32], index: 0, kind: input, shape index: {}]   ;;  %s279_s1 = inlined_call_operand.hbm [shape: f32[32,128], index: 1, kind: input, shape index: {}]   ;;  %s280_s2 = inlined_call_operand.hbm [shape: f32[16,128], index: 2, kind: output, shape index: {}]  }
   0x1   :  { %8 = vsyncpa [#allocation6], 0 }
   0x2   :  { %9 = vsyncpa [#allocation4], 0  ;;  %s238_s9 = smov [#allocation2]  }
   0x3   :  { %s15_s10 = sshll.u32 %s238_s9, 4  ;;  %s16_s10 = int_to_ptr.vmem [resolvable:$true] %s15_s10 }
   0x4   :  { %s180_s11 = scalar_lea.vmem %s16_s10, 256  ;;  %p185_p1 = scmp.lt.s32.totalorder %s16_s10, %s16_s10 }
   0x5   :  { %p181_p0 = scmp.ne.s32.totalorder %s16_s10, %s180_s11  ;;  %p186_p2 = scmp.lt.s32.totalorder %s180_s11, %s180_s11 }
   0x7   :  { %p187_p3 = por %p186_p2, %p185_p1 }
   0x9   :  { %p188_p4 = pnand %p187_p3, %p181_p0 }
   0xb   :  { %191 = shalt.err (!%p188_p4)
}
   0xc   :  { %s239_s12 = smov 128   ;;  %s240_s13 = smov 8  }
   0xd   :  { %21 = dma.hbm_to_vmem [thread:$0]  %s278_s0, 256, %s16_s10, [#allocation3], %s239_s12, %s239_s12, %s240_s13  }
   0xe   :  { %s241_s16 = smov [#allocation5]  }
   0xf   :  { %s27_s17 = sshll.u32 %s241_s16, 4  ;;  %s28_s17 = int_to_ptr.vmem [resolvable:$true] %s27_s17 }
  0x10   :  { %s200_s18 = scalar_lea.vmem %s28_s17, 512  ;;  %p205_p6 = scmp.lt.s32.totalorder %s28_s17, %s28_s17 }
  0x11   :  { %p201_p5 = scmp.ne.s32.totalorder %s28_s17, %s200_s18  ;;  %p206_p7 = scmp.lt.s32.totalorder %s200_s18, %s200_s18 }
  0x13   :  { %p207_p8 = por %p206_p7, %p205_p6 }
  0x15   :  { %p208_p9 = pnand %p207_p8, %p201_p5 }
  0x17   :  { %211 = shalt.err (!%p208_p9)
}
  0x18   :  { %33 = dma.hbm_to_vmem [thread:$0]  %s279_s1, 512, %s28_s17, [#allocation6], %s239_s12, %s239_s12, %s240_s13  }
  0x19   :  { %232 = dma.done.wait [#allocation3], 256  }
  0x1a   :  { %233 = vsyncadd [#allocation3], 4294967040 }
  0x1b   :  { %234 = dma.done.wait [#allocation6], 512  }
  0x1c   :  { %235 = vsyncadd [#allocation6], 4294966784  ;;  %vm46_vm0 = vcmask 261120   ;;  %v45_v0 = vld [vmem:[#allocation5 + $0x18] sm:$0xff]  ;;  %v44_v1 = vld [vmem:[#allocation5 + $0x10] sm:$0xff]  ;;  %s242_s0 = smov [#allocation7]  }
  0x1d   :  { %156 = vmatprep.subr.mxu0 %v45_v0  ;;  %v40_v2 = vld [vmem:[#allocation2] sm:$0xff]  ;;  %v43_v3 = vld [vmem:[#allocation5 + $0x8] sm:$0xff]  ;;  %v42_v4 = vld [vmem:[#allocation5] sm:$0xff]  ;;  %s135_s1 = sshll.u32 %s242_s0, 4  ;;  %s136_s1 = int_to_ptr.vmem [resolvable:$true] %s135_s1 }
  0x1e   :  { %157 = vmatpush3.msra.mxu0 %v45_v0  ;;  %164 = vmatprep.mubr.msk.f32.mxu0 %vm46_vm0, %v40_v2  ;;  %v41_v5 = vld [vmem:[#allocation2 + $0x8] sm:$0xff]  ;;  %s212_s21 = scalar_lea.vmem %s136_s1, 256  ;;  %p217_p11 = scmp.lt.s32.totalorder %s136_s1, %s136_s1 }
  0x1f   :  { %158 = vmatprep.subr.mxu0 %v44_v1  ;;  %p213_p10 = scmp.ne.s32.totalorder %s136_s1, %s212_s21  ;;  %p218_p12 = scmp.lt.s32.totalorder %s212_s21, %s212_s21 }
  0x20   :  { %159 = vmatpush3.msra.mxu0 %v44_v1 }
  0x21   :  { %160 = vmatprep.subr.mxu0 %v43_v3  ;;  %p219_p13 = por %p218_p12, %p217_p11 }
  0x22   :  { %161 = vmatpush3.msra.mxu0 %v43_v3 }
  0x23   :  { %162 = vmatprep.subr.mxu0 %v42_v4  ;;  %p220_p0 = pnand %p219_p13, %p213_p10 }
  0x24   :  { %163 = vmatpush3.msra.mxu0 %v42_v4 }
  0x25   :  { %165 = vmatmul.mubr.msk.f32.vlgmr.msra.gmra.mxu0 %vm46_vm0, %v41_v5 }
  0xe5   :  { %v166_v6 = vpop.f32.mrf.mxu0 }
  0xe6   :  { %129 = vst [vmem:[#allocation7 + $0x8] sm:$0xff] %v166_v6 }
  0xe7   :  { %v119_v7 = vpop.f32.mrf.mxu0 }
  0xe8   :  { %128 = vst [vmem:[#allocation7] sm:$0xff] %v119_v7 }
  0xe9   :  { %223 = shalt.err (!%p220_p0)
}
  0xea   :  { %141 = dma.vmem_to_hbm [thread:$0]  %s136_s1, 256, %s280_s2, [#allocation4], %s239_s12, %s239_s12, %s240_s13  }
  0xeb   :  { %236 = dma.done.wait [#allocation4], 256  }
  0xec   :  { %237 = vsyncadd [#allocation4], 4294967040 }
  0xed   :  { %145 = vsyncpa [#allocation3], 1 }
  0xee   :  { %146 = vsyncpa [#allocation6], 1 }
  0xef   :  { %147 = vsyncpa [#allocation4], 1 }

</bundles_post_ra>
